<compile_context>
chip_gen: v5e
topology: v5e:2x2
jax: 0.10.0
libtpu: 0.0.40
codegen_flags: <defaults>
</compile_context>

<pallas_src>
import numpy as np
import jax
import jax.numpy as jnp
from jax.experimental import pallas as pl
from jax.experimental.pallas import tpu as pltpu


def _identity_kernel(tb_ref, out_ref):
    # forward() == return self.time_bins  -> identity copy of the tile.
    out_ref[...] = tb_ref[...]


def _pick_row_tile(num_batch: int, num_bins: int, itemsize: int) -> int:
    """Row-tile size for the copy.

    Tile only when both dims meet the (8,128) granularity; otherwise keep the
    full array as one block (legal because block_shape == array shape).
    """
    if num_batch % 8 != 0 or num_bins % 128 != 0:
        return num_batch
    # VMEM budget: default double-buffering keeps ~2 input + 2 output blocks
    # resident -> 4 * tile_bytes.  Keep a single tile under ~4 MiB so the kernel
    # fits v5e's 16 MiB default scoped VMEM and v7x's 64 MiB physical VMEM.
    vmem_tile_budget = 4 * 1024 * 1024
    max_rows = max(8, vmem_tile_budget // max(1, num_bins * itemsize))
    tile = min(512, num_batch, max_rows)
    tile = max(8, (tile // 8) * 8)
    # The grid needs an even split; shrink in steps of 8 until it divides.
    while tile > 8 and num_batch % tile != 0:
        tile -= 8
    if num_batch % tile != 0:
        tile = num_batch
    return tile


def gradient_descent_deconvolution_forward(
    time_bins: jax.Array, *, use_pallas: bool = True
) -> jax.Array:
    """Pallas implementation of GradientDescentDeconvolution.forward()."""
    if not use_pallas:
        # Highest-value option from the perf review: forward is an identity,
        # so just hand back the parameter (no HBM traffic at all).
        return time_bins

    num_batch, num_bins = time_bins.shape
    tm = _pick_row_tile(num_batch, num_bins, time_bins.dtype.itemsize)

    return pl.pallas_call(
        _identity_kernel,
        out_shape=jax.ShapeDtypeStruct((num_batch, num_bins), time_bins.dtype),
        grid=(num_batch // tm,),
        in_specs=[pl.BlockSpec((tm, num_bins), lambda i: (i, 0))],
        out_specs=pl.BlockSpec((tm, num_bins), lambda i: (i, 0)),
        # Output aliases the parameter's HBM buffer: no second allocation,
        # identity writeback lands in-place.
        input_output_aliases={0: 0},
        compiler_params=pltpu.CompilerParams(
            dimension_semantics=("parallel",),
        ),
    )(time_bins)


def init_time_bins(key, num_batch: int, num_bins: int) -> jax.Array:
    # Matches: 1e-09 * torch.randn((num_batch, num_bins))
    return 1e-9 * jax.random.normal(key, (num_batch, num_bins), dtype=jnp.float32)


# TODO(synk): get_params(lr) is optimizer bookkeeping (PyTorch param groups); it has
# no Pallas equivalent and is left to the training-loop glue.


if __name__ == "__main__":
    key = jax.random.PRNGKey(0)
    num_batch, num_bins = 2, 16  # small shapes consistent with the module

    # Deterministic in-script parameter initialization (no checkpoint load).
    time_bins = init_time_bins(key, num_batch, num_bins)

    # Snapshot the expected values to host BEFORE the call: input_output_aliases
    # donates the parameter buffer to the output, so the original device array
    # must not be reused afterwards.
    expected = np.asarray(jax.device_get(time_bins))

    out = gradient_descent_deconvolution_forward(time_bins)
    out = jax.block_until_ready(out)

    # Sanity check: forward is exactly the parameter tensor.
    assert out.shape == (num_batch, num_bins)
    assert out.dtype == jnp.float32
    assert np.array_equal(np.asarray(jax.device_get(out)), expected)

    print("KERNEL_OK")
</pallas_src>

<mosaic_0001>
module attributes {stable_mosaic.version = 11 : i64} {
  func.func @_identity_kernel(%arg0: i32, %arg1: memref<2x16xf32, #tpu.memory_space<vmem>>, %arg2: memref<2x16xf32, #tpu.memory_space<vmem>>) attributes {dimension_semantics = [#tpu.dimension_semantics<parallel>], iteration_bounds = array<i64: 1>, scalar_prefetch = 0 : i64, scratch_operands = 0 : i64, tpu.core_type = #tpu.core_type<tc>, window_params = [{transform_indices = @transform_0, window_bounds = array<i64: 2, 16>}, {transform_indices = @transform_1, window_bounds = array<i64: 2, 16>}]} {
    %c0 = arith.constant 0 : index
    %c0_0 = arith.constant 0 : index
    %0 = vector.load %arg1[%c0, %c0_0] : memref<2x16xf32, #tpu.memory_space<vmem>>, vector<2x16xf32>
    %c0_1 = arith.constant 0 : index
    %c0_2 = arith.constant 0 : index
    %1 = vector.load %arg2[%c0_1, %c0_2] : memref<2x16xf32, #tpu.memory_space<vmem>>, vector<2x16xf32>
    tpu.vector_store %arg2[%c0_1, %c0_2], %0 {strides = array<i32>} : memref<2x16xf32, #tpu.memory_space<vmem>>, vector<2x16xf32>,
    return
  }
  func.func @transform_0(%arg0: i32) -> (i32, i32) {
    %c0_i32 = arith.constant 0 : i32
    %c0_i32_0 = arith.constant 0 : i32
    return %arg0, %c0_i32 : i32, i32
  }
  func.func @transform_1(%arg0: i32) -> (i32, i32) {
    %c0_i32 = arith.constant 0 : i32
    %c0_i32_0 = arith.constant 0 : i32
    return %arg0, %c0_i32 : i32, i32
  }
}

</mosaic_0001>

<bundles_post_ra>
// kernel: tpu_custom_call.1
= control target key start
LH: loop header
LB: loop body
LE: loop exit
PB: predicated region body
PF: predicated region fallthrough
CT: control target
= control target key end

     0   :  { %6 = vsyncpa [#allocation3], 0  ;;  %s115_s0 = inlined_call_operand.hbm [shape: f32[2,16], index: 0, kind: input, shape index: {}, may-alias: {0,1}]   ;;  %s116_s1 = inlined_call_operand.hbm [shape: f32[2,16], index: 1, kind: output, shape index: {}, may-alias: {0,1}]  }
   0x1   :  { %7 = vsyncpa [#allocation4], 0  ;;  %s13_s8 = sshll.u32 %s115_s0, 4  ;;  %s97_s9 = smov [#allocation2]   ;;  %s14_s8 = int_to_ptr.hbm [resolvable:$true] %s13_s8 }
   0x2   :  { %s15_s10 = sshll.u32 %s97_s9, 4  ;;  %s16_s10 = int_to_ptr.vmem [resolvable:$true] %s15_s10 }
   0x3   :  { %18 = dma.hbm_to_vmem [thread:$0]  %s14_s8, 32, %s16_s10, [#allocation3]  }
   0x4   :  { %93 = dma.done.wait [#allocation3], 32  }
   0x5   :  { %94 = vsyncadd [#allocation3], 4294967264  ;;  %s98_s11 = smov [#allocation5]   ;;  %s33_s15 = sshll.u32 %s116_s1, 4  ;;  %vm24_vm0 = vcmask 123904   ;;  %s34_s15 = int_to_ptr.hbm [resolvable:$true] %s33_s15 }
   0x6   :  { %s31_s12 = sshll.u32 %s98_s11, 4  ;;  %v23_v0 = vld [vmem:[#allocation2] sm:$0x3]  ;;  %s32_s12 = int_to_ptr.vmem [resolvable:$true] %s31_s12 }
   0x7   :  { %25 = vst.msk [vmem:[#allocation5] sm:$0x3] %vm24_vm0, %v23_v0 }
   0x8   :  { %36 = dma.vmem_to_hbm [thread:$0]  %s32_s12, 32, %s34_s15, [#allocation4]  }
   0x9   :  { %95 = dma.done.wait [#allocation4], 32  }
   0xa   :  { %96 = vsyncadd [#allocation4], 4294967264 }
   0xb   :  { %41 = vsyncpa [#allocation3], 1 }
   0xc   :  { %42 = vsyncpa [#allocation4], 1 }

</bundles_post_ra>
